<compile_context>
chip_gen: v7x
topology: tpu7x:2x2x1
jax: 0.10.0
libtpu: 0.0.40
codegen_flags: <defaults>
</compile_context>

<pallas_src>
import jax
import jax.numpy as jnp
from jax.experimental import pallas as pl
from jax.experimental.pallas import tpu as pltpu


def _round_up(x, m):
    return ((x + m - 1) // m) * m


# ----------------------------------------------------------------------------
# Minimal env-spec stand-in (all-discrete obs/actions, matching the branches
# exercised by the reference forward).
# ----------------------------------------------------------------------------
class EnvSpec:
    DISCRETE = "discrete"
    BOX = "box"

    def __init__(self, obs_dims_and_types, act_dims_and_types,
                 combine_actions=False, orig_act_dims=()):
        self.obs_dims_and_types = obs_dims_and_types
        self.act_dims_and_types = act_dims_and_types
        self.combine_actions = combine_actions
        self.orig_act_dims = orig_act_dims

    def is_discrete(self, t):
        return t == self.DISCRETE

    def is_box(self, t):
        return t == self.BOX


# ----------------------------------------------------------------------------
# Pallas kernel: per batch tile, build the concatenated one-hot block in VMEM
# from global row indices and do a single MXU matmul against the stacked
# (weights + bias row) matrix.
# ----------------------------------------------------------------------------
def _encoder_kernel(gidx_ref, w_ref, o_ref):
    # gidx_ref: (TB, S)  int32 global row indices into W (bias row included)
    # w_ref:    (Fp, Dp) bf16 stacked weights (+ bias row, zero padded)
    # o_ref:    (TB, Dp) f32
    g = gidx_ref[...]
    tb = o_ref.shape[0]
    fp = w_ref.shape[0]
    iota = jax.lax.broadcasted_iota(jnp.int32, (tb, fp), 1)
    # Per-source row ranges are disjoint, so the sum of per-source one-hots is
    # exactly the concatenated one-hot block.  S is a small compile-time
    # constant -> unrolled VPU loop.
    x = jnp.zeros((tb, fp), dtype=jnp.float32)
    for s in range(g.shape[1]):
        x = x + (iota == g[:, s:s + 1]).astype(jnp.float32)
    o_ref[...] = jnp.dot(x.astype(jnp.bfloat16), w_ref[...],
                         preferred_element_type=jnp.float32)


def _encode_pallas(gidx, w_bf16, batch, out_dim, tile_b=None):
    b, s = gidx.shape
    fp, dp = w_bf16.shape

    if tile_b is None:
        tile_b = min(256, _round_up(b, 8))
    tile_b = _round_up(min(tile_b, _round_up(b, 8)), 8)
    bp = _round_up(b, tile_b)
    if bp != b:
        gidx = jnp.pad(gidx, ((0, bp - b), (0, 0)))
    grid = (bp // tile_b,)

    # VMEM budget: stacked W (double-buffered), index / output blocks
    # (double-buffered) and in-kernel one-hot temporaries.
    vmem_need = (2 * fp * dp * 2          # W bf16
                 + 2 * tile_b * s * 4     # gidx blocks
                 + 2 * tile_b * dp * 4    # output blocks
                 + 2 * tile_b * fp * 4)   # in-kernel one-hot temporaries
    vmem_limit = int(min(max(2 * vmem_need, 8 << 20), 48 << 20))
    # TODO(synk): if the stacked W ever outgrows the v7x budget (~24 MiB),
    # add a K grid axis + f32 accumulator instead of a full-array W block.

    out = pl.pallas_call(
        _encoder_kernel,
        out_shape=jax.ShapeDtypeStruct((bp, dp), jnp.float32),
        grid=grid,
        in_specs=[
            pl.BlockSpec((tile_b, s), lambda i: (i, 0)),   # global indices
            pl.BlockSpec((fp, dp), lambda i: (0, 0)),      # stacked W (+bias)
        ],
        out_specs=pl.BlockSpec((tile_b, dp), lambda i: (i, 0)),
        compiler_params=pltpu.CompilerParams(
            dimension_semantics=("parallel",),
            vmem_limit_bytes=vmem_limit),
        cost_estimate=pl.CostEstimate(
            flops=2 * bp * fp * dp,
            transcendentals=0,
            bytes_accessed=int(gidx.size * 4 + w_bf16.size * 2 + bp * dp * 4)),
    )(gidx, w_bf16)
    return out[:batch, :out_dim]


# ----------------------------------------------------------------------------
# NewPolicyEncoder (JAX / Pallas)
# ----------------------------------------------------------------------------
class NewPolicyEncoder:
    def __init__(self, env_spec, internal_dim, input_prev_actions=True,
                 name="online", key=None):
        self.env_spec = env_spec
        self.input_dim = internal_dim
        self.model_name = name
        self.input_prev_actions = input_prev_actions
        self.layer_vars = {}

        if key is None:
            key = jax.random.PRNGKey(0)

        # bias: init to 0 (matches nn.init.constant_(val=0))
        self.bias = jnp.zeros((internal_dim,), dtype=jnp.float32)

        def _normal(k, shape):
            return (0.01 * jax.random.normal(k, shape)).astype(jnp.float32)

        self._weight_names = []
        self._source_dims = []

        for i, (obs_dim, _obs_type) in enumerate(env_spec.obs_dims_and_types):
            key, sub = jax.random.split(key)
            wname = name + "w_state%d" % i
            self.layer_vars[wname] = _normal(sub, (obs_dim, internal_dim))
            self._weight_names.append(wname)
            self._source_dims.append(obs_dim)

        if self.input_prev_actions:
            if env_spec.combine_actions:
                act_dims = list(env_spec.orig_act_dims)
            else:
                act_dims = [d for (d, _t) in env_spec.act_dims_and_types]
            for i, act_dim in enumerate(act_dims):
                key, sub = jax.random.split(key)
                wname = name + "w_prev_action%d" % i
                self.layer_vars[wname] = _normal(sub, (act_dim, internal_dim))
                self._weight_names.append(wname)
                self._source_dims.append(act_dim)

        self._refresh_stacked_weights()

    # ------------------------------------------------------------------ utils
    def _refresh_stacked_weights(self):
        """Stack per-source weights (+ bias row) into one padded matrix."""
        d = self.input_dim
        offsets, off = [], 0
        for dim in self._source_dims:
            offsets.append(off)
            off += dim
        self._row_offsets = offsets
        self._bias_row = off                       # row index of the bias
        f_total = off + 1
        fp = max(_round_up(f_total, 8), 8)
        dp = max(_round_up(d, 128), 128)
        w = jnp.zeros((fp, dp), dtype=jnp.float32)
        for wname, dim, o in zip(self._weight_names, self._source_dims,
                                 offsets):
            w = w.at[o:o + dim, :d].set(self.layer_vars[wname])
        w = w.at[off, :d].set(self.bias)
        self._w_stacked_f32 = w
        self._w_stacked_bf16 = w.astype(jnp.bfloat16)

    def _build_global_indices(self, observations, prev_actions):
        """(B, S+1) int32 global row indices into the stacked W (plain JAX)."""
        cols = []
        src = 0
        for i, (obs_dim, obs_type) in enumerate(
                self.env_spec.obs_dims_and_types):
            assert self.env_spec.is_discrete(obs_type)
            idx = observations[i].astype(jnp.int32)
            cols.append(idx + self._row_offsets[src])
            src += 1

        if self.input_prev_actions:
            if self.env_spec.combine_actions:
                # Integer decode of the combined action index (torch uses
                # float fmod + true division; identical for non-negative ints).
                prev_action = prev_actions[0].astype(jnp.int32)
                for action_dim in self.env_spec.orig_act_dims:
                    act = jnp.mod(prev_action, action_dim)
                    cols.append(act + self._row_offsets[src])
                    prev_action = prev_action // action_dim
                    src += 1
            else:
                for i, (act_dim, act_type) in enumerate(
                        self.env_spec.act_dims_and_types):
                    if self.env_spec.is_discrete(act_type):
                        act = jnp.mod(prev_actions[i].astype(jnp.int32),
                                      act_dim)
                        cols.append(act + self._row_offsets[src])
                    else:
                        # TODO(synk): box (continuous) prev-actions need a
                        # dense side input; not supported by the index-only
                        # fused kernel.
                        raise NotImplementedError(
                            "box prev_actions not supported")
                    src += 1

        batch = cols[0].shape[0]
        cols.append(jnp.full((batch,), self._bias_row, dtype=jnp.int32))
        return jnp.stack(cols, axis=-1)            # (B, S+1)

    # --------------------------------------------------------------- forward
    def forward(self, observations, prev_actions, tile_b=None):
        gidx = self._build_global_indices(observations, prev_actions)
        return _encode_pallas(gidx, self._w_stacked_bf16,
                              batch=gidx.shape[0], out_dim=self.input_dim,
                              tile_b=tile_b)

    def forward_reference(self, observations, prev_actions):
        """Pure-JAX reference matching the kernel math (bf16 W, f32 acc)."""
        gidx = self._build_global_indices(observations, prev_actions)
        fp = self._w_stacked_bf16.shape[0]
        x = jnp.sum(jax.nn.one_hot(gidx, fp, dtype=jnp.float32), axis=1)
        return (x @ self._w_stacked_bf16.astype(jnp.float32))[:, :self.input_dim]

    def forward_reference_f32(self, observations, prev_actions):
        """Pure-JAX reference of the intended module math, full f32."""
        gidx = self._build_global_indices(observations, prev_actions)
        fp = self._w_stacked_f32.shape[0]
        x = jnp.sum(jax.nn.one_hot(gidx, fp, dtype=jnp.float32), axis=1)
        return (x @ self._w_stacked_f32)[:, :self.input_dim]


# ----------------------------------------------------------------------------
# Demo / test
# ----------------------------------------------------------------------------
if __name__ == "__main__":
    key = jax.random.PRNGKey(0)

    # Small, all-discrete env spec: two observation streams, two action streams.
    env_spec = EnvSpec(
        obs_dims_and_types=[(6, EnvSpec.DISCRETE), (5, EnvSpec.DISCRETE)],
        act_dims_and_types=[(3, EnvSpec.DISCRETE), (4, EnvSpec.DISCRETE)],
        combine_actions=False,
    )
    internal_dim = 32
    batch = 16

    key, kinit, ko0, ko1, ka0, ka1 = jax.random.split(key, 6)
    encoder = NewPolicyEncoder(env_spec, internal_dim,
                               input_prev_actions=True, name="online",
                               key=kinit)

    observations = [
        jax.random.randint(ko0, (batch,), 0, 6, dtype=jnp.int32),
        jax.random.randint(ko1, (batch,), 0, 5, dtype=jnp.int32),
    ]
    prev_actions = [
        jax.random.randint(ka0, (batch,), 0, 3, dtype=jnp.int32),
        jax.random.randint(ka1, (batch,), 0, 4, dtype=jnp.int32),
    ]

    # tile_b=8 -> grid=(2,) so the batch-tiled "parallel" pipeline is exercised.
    out = encoder.forward(observations, prev_actions, tile_b=8)
    out = jax.block_until_ready(out)

    ref_bf16 = encoder.forward_reference(observations, prev_actions)
    ref_f32 = encoder.forward_reference_f32(observations, prev_actions)

    assert out.shape == (batch, internal_dim)
    assert jnp.allclose(out, ref_bf16, atol=1e-5, rtol=1e-5), \
        "mismatch vs bf16-weight reference"
    assert jnp.allclose(out, ref_f32, atol=5e-3, rtol=5e-2), \
        "mismatch vs f32 reference"

    print("KERNEL_OK")
</pallas_src>

<mosaic_0001>
module attributes {stable_mosaic.version = 11 : i64} {
  func.func @_encoder_kernel(%arg0: i32, %arg1: memref<8x5xi32, #tpu.memory_space<vmem>>, %arg2: memref<24x128xbf16, #tpu.memory_space<vmem>>, %arg3: memref<8x128xf32, #tpu.memory_space<vmem>>) attributes {dimension_semantics = [#tpu.dimension_semantics<parallel>], iteration_bounds = array<i64: 2>, scalar_prefetch = 0 : i64, scratch_operands = 0 : i64, tpu.core_type = #tpu.core_type<tc>, window_params = [{transform_indices = @transform_0, window_bounds = array<i64: 8, 5>}, {pipeline_mode = #tpu.pipeline_mode<synchronous>, transform_indices = @transform_1, window_bounds = array<i64: 24, 128>}, {transform_indices = @transform_2, window_bounds = array<i64: 8, 128>}]} {
    %c0 = arith.constant 0 : index
    %c0_0 = arith.constant 0 : index
    %0 = vector.load %arg1[%c0, %c0_0] : memref<8x5xi32, #tpu.memory_space<vmem>>, vector<8x5xi32>
    %1 = tpu.iota {dimensions = array<i32: 1>} : vector<8x24xi32>
    %cst = arith.constant 0.000000e+00 : f32
    %2 = vector.broadcast %cst : f32 to vector<8x24xf32>
    %3 = vector.extract_strided_slice %0 {offsets = [0, 0], sizes = [8, 1], strides = [1, 1]} : vector<8x5xi32> to vector<8x1xi32>
    %4 = vector.broadcast %3 : vector<8x1xi32> to vector<8x24xi32>
    %5 = arith.cmpi eq, %1, %4 : vector<8x24xi32>
    %6 = arith.extui %5 : vector<8x24xi1> to vector<8x24xi32>
    %7 = arith.sitofp %6 : vector<8x24xi32> to vector<8x24xf32>
    %8 = arith.addf %2, %7 : vector<8x24xf32>
    %9 = vector.extract_strided_slice %0 {offsets = [0, 1], sizes = [8, 1], strides = [1, 1]} : vector<8x5xi32> to vector<8x1xi32>
    %10 = vector.broadcast %9 : vector<8x1xi32> to vector<8x24xi32>
    %11 = arith.cmpi eq, %1, %10 : vector<8x24xi32>
    %12 = arith.extui %11 : vector<8x24xi1> to vector<8x24xi32>
    %13 = arith.sitofp %12 : vector<8x24xi32> to vector<8x24xf32>
    %14 = arith.addf %8, %13 : vector<8x24xf32>
    %15 = vector.extract_strided_slice %0 {offsets = [0, 2], sizes = [8, 1], strides = [1, 1]} : vector<8x5xi32> to vector<8x1xi32>
    %16 = vector.broadcast %15 : vector<8x1xi32> to vector<8x24xi32>
    %17 = arith.cmpi eq, %1, %16 : vector<8x24xi32>
    %18 = arith.extui %17 : vector<8x24xi1> to vector<8x24xi32>
    %19 = arith.sitofp %18 : vector<8x24xi32> to vector<8x24xf32>
    %20 = arith.addf %14, %19 : vector<8x24xf32>
    %21 = vector.extract_strided_slice %0 {offsets = [0, 3], sizes = [8, 1], strides = [1, 1]} : vector<8x5xi32> to vector<8x1xi32>
    %22 = vector.broadcast %21 : vector<8x1xi32> to vector<8x24xi32>
    %23 = arith.cmpi eq, %1, %22 : vector<8x24xi32>
    %24 = arith.extui %23 : vector<8x24xi1> to vector<8x24xi32>
    %25 = arith.sitofp %24 : vector<8x24xi32> to vector<8x24xf32>
    %26 = arith.addf %20, %25 : vector<8x24xf32>
    %27 = vector.extract_strided_slice %0 {offsets = [0, 4], sizes = [8, 1], strides = [1, 1]} : vector<8x5xi32> to vector<8x1xi32>
    %28 = vector.broadcast %27 : vector<8x1xi32> to vector<8x24xi32>
    %29 = arith.cmpi eq, %1, %28 : vector<8x24xi32>
    %30 = arith.extui %29 : vector<8x24xi1> to vector<8x24xi32>
    %31 = arith.sitofp %30 : vector<8x24xi32> to vector<8x24xf32>
    %32 = arith.addf %26, %31 : vector<8x24xf32>
    %33 = arith.truncf %32 : vector<8x24xf32> to vector<8x24xbf16>
    %c0_1 = arith.constant 0 : index
    %c0_2 = arith.constant 0 : index
    %34 = vector.load %arg2[%c0_1, %c0_2] : memref<24x128xbf16, #tpu.memory_space<vmem>>, vector<24x128xbf16>
    %cst_3 = arith.constant dense<0.000000e+00> : vector<8x128xf32>
    %35 = tpu.matmul %33, %34, %cst_3 {dimension_numbers = #tpu.dot_dimension_numbers<[1], [0], [0], [1], [0, 0, 1, 1], [], []>} : vector<8x24xbf16>, vector<24x128xbf16>, vector<8x128xf32> -> vector<8x128xf32>
    %c0_4 = arith.constant 0 : index
    %c0_5 = arith.constant 0 : index
    %36 = vector.load %arg3[%c0_4, %c0_5] : memref<8x128xf32, #tpu.memory_space<vmem>>, vector<8x128xf32>
    tpu.vector_store %arg3[%c0_4, %c0_5], %35 {strides = array<i32>} : memref<8x128xf32, #tpu.memory_space<vmem>>, vector<8x128xf32>,
    return
  }
  func.func @transform_0(%arg0: i32) -> (i32, i32) {
    %c0_i32 = arith.constant 0 : i32
    %c0_i32_0 = arith.constant 0 : i32
    return %arg0, %c0_i32 : i32, i32
  }
  func.func @transform_1(%arg0: i32) -> (i32, i32) {
    %c0_i32 = arith.constant 0 : i32
    %c0_i32_0 = arith.constant 0 : i32
    %c0_i32_1 = arith.constant 0 : i32
    return %c0_i32, %c0_i32_0 : i32, i32
  }
  func.func @transform_2(%arg0: i32) -> (i32, i32) {
    %c0_i32 = arith.constant 0 : i32
    %c0_i32_0 = arith.constant 0 : i32
    return %arg0, %c0_i32 : i32, i32
  }
}

</mosaic_0001>

<bundles_post_ra>
// kernel: tpu_custom_call.1
= control target key start
LH: loop header
LB: loop body
LE: loop exit
PB: predicated region body
PF: predicated region fallthrough
CT: control target
= control target key end

     0   :  { %7 = vsyncpa [#allocation3], 0  ;;  %s589_s0 = inlined_call_operand.vmem [shape: s32[16,5], index: 0, kind: input, shape index: {}]   ;;  %s590_s1 = inlined_call_operand.vmem [shape: bf16[24,128], index: 1, kind: input, shape index: {}]   ;;  %s591_s2 = inlined_call_operand.hbm [shape: f32[16,128], index: 2, kind: output, shape index: {}]  }
   0x1   :  { %9 = vsyncpa [#allocation3 + $0x1], 0  ;;  %s483_s9 = smov 0   ;;  %s485_s10 = smov 0  }
   0x2   :  { %s487_s11 = smov 0   ;;  %s489_s12 = smov 0  }
   0x3 LB: > { %s504_s13 = sadd.s32 4294967295, %s458_s12   ;;  %s313_s14 = sadd.s32 4294967294, %s458_s12   ;;  %s458_s12 = sphi %s489_s12, %s597_s12   ;;  %s454_s11 = sphi %s487_s11, %s596_s11   ;;  %s450_s10 = sphi %s485_s10, %s595_s10   ;;  %s446_s9 = sphi %s483_s9, %s594_s9  }
   0x4   : > { %s508_s15 = sadd.s32 1, %s458_s12   ;;  %s69_s16 = sadd.s32 1, %s454_s11 }
   0x5   : > { %s66_s17 = ssub.s32 %s458_s12, %s508_s15  ;;  %p79_p0 = scmp.ne.s32.totalorder %s454_s11, %s450_s10 }
   0x6   : > { %p67_p1 = scmp.eq.s32.totalorder %s66_s17, 0  ;;  %p80_p2 = scmp.eq.s32.totalorder %s504_s13, 1 }
   0x7   : > { %p85_p3 = scmp.ne.s32.totalorder %s450_s10, %s446_s9  ;;  %p86_p4 = scmp.eq.s32.totalorder %s313_s14, 1 }
   0x8   : > { %s519_s18 = scalar_select %p67_p1, %s454_s11, %s69_s16  }
   0x9   : > { %p521_p5 = por %p80_p2, %p79_p0  ;;  %p525_p6 = por %p86_p4, %p85_p3 }
   0xa   : > { %p316_p7 = scmp.ge.s32.totalorder %s458_s12, 1  ;;  %p114_p8 = scmp.lt.s32.totalorder %s458_s12, 3 }
   0xc   : > { %p115_p9 = pnand %p316_p7, %p114_p8 }
   0xd   : > { %p135_p10 = scmp.lt.s32.totalorder (!%p115_p9), %s504_s13, 1  ;;  %v460_v0 = vmov (!%p115_p9), 0   ;;  %v461_v1 = vmov (!%p115_p9), 2   ;;  %v462_v2 = vmov (!%p115_p9), 0.0   ;;  %v463_v4 = vmov (!%p115_p9), 1   ;;  %v394_v6 = vld [vmem:[%s590_s1] sm:$0xff] (!%p115_p9)  }
   0xe   : > { %118 = sbr.rel (%p115_p9) target bundleno = 398 (0x18e), region = 28  ;;  %388 = vset.pattern.permute.xlu0 (!%p115_p9), %v460_v0  ;;  %390 = vset.pattern.permute.xlu1 (!%p115_p9), %v461_v1  ;;  %v464_v5 = vmov (!%p115_p9), 3   ;;  %v465_v7 = vmov (!%p115_p9), 4   ;;  %v395_v8 = vld [vmem:[%s590_s1 + $0x8] ss:$0 sps:$4 sm:$0xff] (!%p115_p9)   ;;  %vm195_vm0 = vcmask (!%p115_p9), 1043456   ;;  %v141_v10 = vlaneseq (!%p115_p9) }
   0xf   : > { %334 = vmatprep.subr.bf16.mxu0 (!%p115_p9), %v462_v2  ;;  %v197_v9 = vsel (!%p115_p9), %vm195_vm0, %v395_v8, 0  ;;  %vm466_vm1 = vmmov (!%p115_p9), 0   ;;  %vm191_vm7 = vcmask (!%p115_p9), 195584   ;;  %s132_s30 = sand.u32 (!%p115_p9), 1, %s450_s10   ;;  %s328_s6 = sshll.u32 (!%p115_p9), %s504_s13, 7 }
  0x10   : > { %335 = vmatpush3.bf16.msra.mxu0 (!%p115_p9), %v394_v6  ;;  %338 = vmatprep.mubr.msk.bf16.mxu0 (!%p115_p9), %vm466_vm1, %v462_v2  ;;  %v142_v11 = vand.u32 (!%p115_p9), 127, %v141_v10  ;;  %s317_s3 = sshll.u32 (!%p115_p9), %s132_s30, 3  ;;  %s549_s14 = scalar_lea.hbm (!%p115_p9), %s591_s2, %s328_s6 }
  0x11   : > { %336 = vmatprep.subr.bf16.mxu0 (!%p115_p9), %v462_v2  ;;  %s134_s4 = scalar_lea.vmem (!%p115_p9), [#allocation2], %s317_s3  ;;  %s241_s16 = scalar_lea.sflag (!%p115_p9), [#allocation3], %s132_s30 }
  0x12   : > { %s254_s5 = sshll.u32 (!%p115_p9), %s134_s4, 4  ;;  %s544_s5 = int_to_ptr.vmem [resolvable:$true] %s254_s5 }
  0x13   : > { %s396_s17 = scalar_lea.vmem (!%p115_p9), %s544_s5, 128 }
  0x14   : > { %337 = vmatpush3.bf16.msra.mxu0 (!%p115_p9), %v197_v9  ;;  %p397_p11 = scmp.ne.s32.totalorder (!%p115_p9), %s544_s5, %s396_s17 }
  0x15   : > { %s136_s21 = scalar_select %p135_p10, %s504_s13, 1 }
  0x16   : > { %p398_p12 = pnand %p397_p11, %p521_p5  ;;  %s467_s13 = smov [#allocation2]  }
  0x17   : > { %s318_s22 = sshll.u32 %s136_s21, 3  ;;  %s400_s21 = sshll.u32 %s467_s13, 4  ;;  %s401_s21 = int_to_ptr.vmem [resolvable:$false] %s400_s21 }
  0x18   : > { %s138_s25 = scalar_lea.vmem %s589_s0, %s318_s22  ;;  %p399_p13 = pneg %p398_p12 }
  0x19   : > { %v140_v3 = vld [vmem:[%s138_s25] sm:$0xff]  ;;  %s402_s22 = scalar_lea.vmem %s401_s21, 256  ;;  %p403_p0 = scmp.lt.s32.totalorder %s544_s5, %s401_s21 }
  0x1a   : > { %144 = vperm.xlu0 %388, %v140_v3   ;;  %158 = vperm.xlu1 %390, %v140_v3   ;;  %p404_p1 = scmp.lt.s32.totalorder %s402_s22, %s396_s17 }
  0x1c   : > { %p405_p2 = por %p404_p1, %p403_p0 }
  0x1e   : > { %389 = vset.pattern.permute.xlu0 %v463_v4  ;;  %391 = vset.pattern.permute.xlu1 %v464_v5  ;;  %p406_p3 = pnand %p405_p2, %p399_p13 }
  0x1f   : > { %151 = vperm.xlu0 %389, %v140_v3   ;;  %165 = vperm.xlu1 %391, %v140_v3  }
  0x23   : > { %392 = vset.pattern.permute.xlu1 %v465_v7  ;;  %393 = vset.pattern.permute.xlu0 %v465_v7 }
  0x24   : > { %172 = vperm.xlu1 %392, %v140_v3  }
  0x99   : > { %v145_v12 = vpop.permute.xlu0 %144  ;;  %v159_v13 = vpop.permute.xlu1 %158 }
  0x9a   : > { %vm146_vm2 = vcmp.eq.s32.totalorder %v142_v11, %v145_v12  ;;  %vm160_vm3 = vcmp.eq.s32.totalorder %v142_v11, %v159_v13 }
  0x9b   : > { %v319_v16 = vsel %vm146_vm2, 1.0, %v462_v2  ;;  %v321_v19 = vsel %vm160_vm3, 1.0, %v462_v2 }
  0x9e   : > { %v152_v14 = vpop.permute.xlu0 %151  ;;  %v166_v15 = vpop.permute.xlu1 %165 }
  0x9f   : > { %vm153_vm4 = vcmp.eq.s32.totalorder %v142_v11, %v152_v14  ;;  %vm167_vm5 = vcmp.eq.s32.totalorder %v142_v11, %v166_v15 }
  0xa0   : > { %v320_v17 = vsel %vm153_vm4, 1.0, %v462_v2  ;;  %v322_v22 = vsel %vm167_vm5, 1.0, %v462_v2 }
  0xa1   : > { %v156_v18 = vadd.f32 %v320_v17, %v319_v16 }
  0xa3   : > { %v163_v20 = vadd.f32 %v321_v19, %v156_v18  ;;  %v173_v21 = vpop.permute.xlu1 %172 }
  0xa4   : > { %vm174_vm6 = vcmp.eq.s32.totalorder %v142_v11, %v173_v21 }
  0xa5   : > { %v170_v23 = vadd.f32 %v322_v22, %v163_v20  ;;  %v323_v24 = vsel %vm174_vm6, 1.0, %v462_v2 }
  0xa7   : > { %v177_v25 = vadd.f32 %v323_v24, %v170_v23 }
  0xa9   : > { %v178_v26 = vpack.c.bf16 %v177_v25, %v177_v25 }
  0xab   : > { %339 = vmatmul.mubr.msk.bf16.vlgmr.msra.gmra.mrb[0].mxu0 %vm191_vm7, %v178_v26 }
 0x17e   : > { %v233_v27 = vpop.f32.mrb[0].mxu0 }
 0x17f   : > { %239 = vst [vmem:[%s134_s4] sm:$0xff] %v233_v27  ;;  %v340_v28 = vpop.f32.mrb[1].mxu0 }
 0x180   : > { %v236_v29 = vpop.f32.mrb[2].mxu0 }
 0x181   : > { %409 = shalt.err (!%p406_p3)
}
 0x182   : > { %s410_s23 = scalar_lea.hbm %s549_s14, 128  ;;  %s414_s26 = scalar_lea.hbm %s591_s2, 256 }
 0x183   : > { %p411_p4 = scmp.ne.s32.totalorder %s549_s14, %s410_s23  ;;  %p415_p9 = scmp.lt.u32.totalorder %s549_s14, %s591_s2 }
 0x184   : > { %p416_p10 = scmp.lt.u32.totalorder %s414_s26, %s410_s23  ;;  %p418_p12 = scmp.lt.u32.totalorder %s410_s23, %s549_s14 }
 0x185   : > { %p412_p7 = pnand %p411_p4, %p521_p5 }
 0x186   : > { %p417_p11 = por %p416_p10, %p415_p9 }
 0x187   : > { %p413_p8 = pneg %p412_p7 }
 0x188   : > { %p419_p13 = por %p418_p12, %p417_p11 }
 0x18a   : > { %p420_p0 = pnand %p419_p13, %p413_p8 }
 0x18c   : > { %423 = shalt.err (!%p420_p0)
}
 0x18d   : > { %342 = dma.vmem_to_hbm [thread:$0]  (%p521_p5), %s544_s5, 128, %s549_s14, %s241_s16   ;;  %v341_v30 = vpop.f32.mrb[3].mxu0 }
 0x18e PF: > { %p348_p1 = scmp.ge.s32.totalorder %s458_s12, 2  ;;  %s266_s29 = sand.u32 1, %s446_s9  }
 0x18f   : > { %s267_s30 = scalar_lea.sflag [#allocation3], %s266_s29 }
 0x190   : > { %p345_p2 = pnand %p348_p1, %p525_p6 }
 0x192   : > { %441 = dma.done.wait (!%p345_p2), %s267_s30, 128  }
 0x193   : > { %443 = vsyncadd (!%p345_p2), %s267_s30, 4294967168  ;;  %p12_p3 = scmp.ge.s32.totalorder %s508_s15, 4   ;;  %s594_s9 = smov %s450_s10 }
 0x194   : > { %s595_s10 = smov %s454_s11  ;;  %s596_s11 = smov %s519_s18 }
 0x195   : > { %s597_s12 = smov %s508_s15  ;;  %14 = sbr.rel (!%p12_p3) target bundleno = 3 (0x3), region = 63 }
 0x19c   :  { %272 = vsyncpa [#allocation3], 1 }
 0x19d   :  { %274 = vsyncpa [#allocation3 + $0x1], 1 }

</bundles_post_ra>
